<compile_context>
chip_gen: v6e
topology: v6e:2x2x1
jax: 0.10.0
libtpu: 0.0.40
codegen_flags: <defaults>
</compile_context>

<pallas_src>
import functools
import math

import jax
import jax.numpy as jnp
from jax import lax
from jax.experimental import pallas as pl
from jax.experimental.pallas import tpu as pltpu

_LOG_BASE = math.log(1000.0)  # NOTE: the module uses base 1000, not 10000.


# --------------------------------------------------------------------------
# PE tile generation (shared by the in-kernel and wrapper paths)
# --------------------------------------------------------------------------
def _pe_tile(s_start, tile_s, d_pad, d_model, dtype):
    """(tile_s, d_pad) positional-encoding tile starting at position s_start.

    cos is folded into sin via cos(t) = sin(t + pi/2), so only ONE
    transcendental is paid per element; exp() is hoisted to a single
    (1, d_pad) row.
    """
    c = -_LOG_BASE / float(d_model)
    dim_row = lax.broadcasted_iota(jnp.int32, (1, d_pad), 1)
    half2 = ((dim_row // 2) * 2).astype(jnp.float32)
    inv_freq = jnp.exp(half2 * c)                                   # (1, D)
    phase = (dim_row % 2).astype(jnp.float32) * (0.5 * math.pi)     # (1, D)
    pos = s_start + lax.broadcasted_iota(jnp.float32, (tile_s, 1), 0)  # (T,1)
    return jnp.sin(pos * inv_freq + phase).astype(dtype)            # (T, D)


# --------------------------------------------------------------------------
# Kernels
# --------------------------------------------------------------------------
def _fused_kernel(x_ref, o_ref, pe_ref, *, tile_s, d_pad, d_model):
    """out = x + PE; PE generated in-kernel and cached in VMEM scratch.

    Grid = (seq_tiles, batch_tiles) with the batch axis innermost and
    'arbitrary' (sequential).  The PE tile only depends on the seq-tile
    index, so it is generated once per seq tile (batch-tile id == 0) and
    reused for the remaining batch iterations.  Do NOT reorder the grid or
    mark the batch axis 'parallel' -- the scratch reuse relies on it.
    """
    s_idx = pl.program_id(0)
    b_idx = pl.program_id(1)

    @pl.when(b_idx == 0)
    def _():
        pe_ref[...] = _pe_tile(s_idx * tile_s, tile_s, d_pad, d_model,
                               pe_ref.dtype)

    acc = x_ref[...].astype(pe_ref.dtype) + pe_ref[...][None, :, :]
    o_ref[...] = acc.astype(o_ref.dtype)


def _add_kernel(x_ref, pe_ref, o_ref):
    """out = x + PE; PE precomputed in the wrapper (small-batch path).

    The PE BlockSpec ignores the batch grid index, so its block stays
    resident in VMEM across the batch axis (re-DMA'd only per seq tile).
    """
    acc = x_ref[...].astype(pe_ref.dtype) + pe_ref[...][None, :, :]
    o_ref[...] = acc.astype(o_ref.dtype)


# --------------------------------------------------------------------------
# Hardware queries (generation-aware sizing)
# --------------------------------------------------------------------------
def _device_kind() -> str:
    try:
        return jax.devices()[0].device_kind.lower()
    except Exception:
        return ""


def _vmem_capacity_bytes() -> int:
    try:
        cap = getattr(pltpu.get_tpu_info(), "vmem_capacity_bytes", None)
        if cap:
            return int(cap)
    except Exception:
        pass
    kind = _device_kind()
    if "v7" in kind:
        return 64 << 20
    if any(t in kind for t in ("v3", "v4", "v5", "v6")):
        return 128 << 20
    return 64 << 20  # unknown: be conservative


def _has_bf16_valu() -> bool:
    kind = _device_kind()
    if not kind:
        return False
    # v5e and older have no bf16 VPU; keep the f32 add path there.
    return not any(t in kind for t in ("v2", "v3", "v4", "v5"))


# --------------------------------------------------------------------------
# Tiling / VMEM budgeting
# --------------------------------------------------------------------------
def _choose_tiling(batch, seq, d_pad, itemsize, pe_itemsize, budget,
                   precompute_pe):
    def vmem_need(ts, bt, nin):
        blk = bt * ts * d_pad * itemsize
        need = nin * blk + 2 * blk                 # pipelined input + output blocks
        if precompute_pe:
            need += 2 * ts * d_pad * pe_itemsize   # resident (double-buffered) PE block
        else:
            need += ts * d_pad * pe_itemsize       # single PE scratch
        return need

    # Sequence tile: as large as the budget allows (up to 1024 rows), since
    # per-grid-step overhead (~0.35 us) favors big blocks.
    tile_s = seq if seq <= 1024 else 1024
    if tile_s != seq:
        tile_s = max(8, (tile_s // 8) * 8)
    n_in_buf = 3                                   # deeper input pipelining
    while vmem_need(tile_s, 1, n_in_buf) > budget and tile_s > 8:
        smaller = max(8, ((tile_s // 2) // 8) * 8)
        if smaller == tile_s:
            break
        tile_s = smaller
    if vmem_need(tile_s, 1, n_in_buf) > budget:
        n_in_buf = 2                               # fall back to double-buffering

    # Megacore (v7x = 2 TensorCores): give the parallel seq axis >= 2 tiles
    # whenever the sequence is long enough to split.
    if pl.cdiv(seq, tile_s) < 2 and seq >= 16:
        tile_s = max(8, ((pl.cdiv(seq, 2) + 7) // 8) * 8)

    # For small feature dims, block several batch rows per grid step so each
    # step moves a reasonably sized HBM slab.
    b_tile = 1
    if d_pad <= 256:
        while (b_tile < batch
               and vmem_need(tile_s, b_tile + 1, n_in_buf) <= budget
               and (b_tile + 1) * tile_s * d_pad * itemsize <= (2 << 20)):
            b_tile += 1

    return tile_s, b_tile, n_in_buf, vmem_need(tile_s, b_tile, n_in_buf)


def _buffered_spec(block_shape, index_map, n_buf):
    """BlockSpec with n_buf-deep pipelining; falls back to the default
    double-buffered spec if this jax version does not expose pipeline_mode."""
    if n_buf != 2:
        try:
            return pl.BlockSpec(block_shape, index_map,
                                pipeline_mode=pl.Buffered(n_buf))
        except Exception:
            pass
    return pl.BlockSpec(block_shape, index_map)


# --------------------------------------------------------------------------
# Public wrapper
# --------------------------------------------------------------------------
def positional_encoding(x: jax.Array, *, d_model: int, seq_len: int,
                        dropout: float = 0.0) -> jax.Array:
    """x: (batch, seq, d_model) with seq <= seq_len.  Returns x + pe."""
    batch, seq, dm = x.shape
    assert dm == d_model and seq <= seq_len

    # ---- dtype / hardware-dependent choices --------------------------------
    vmem_phys = _vmem_capacity_bytes()
    bf16_add = (x.dtype == jnp.bfloat16) and _has_bf16_valu()
    add_dtype = jnp.bfloat16 if bf16_add else jnp.float32

    # ---- lane-dense feature dim ---------------------------------------------
    # Pad d_model to a multiple of 128 so stores are unmasked vst (not
    # vst.msk).  For common transformer widths this is a no-op; otherwise the
    # wrapper pays one pad + one slice copy (accepted trade per review).
    d_pad = ((d_model + 127) // 128) * 128
    x_in = x if d_pad == d_model else jnp.pad(
        x, ((0, 0), (0, 0), (0, d_pad - d_model)))

    # ---- VMEM budget (generation-aware) -------------------------------------
    # Scoped-VMEM request: ~50% of physical on v7x (64 MiB chips), ~60% on the
    # 128 MiB chips; tiles are sized against that minus headroom for Mosaic's
    # internal scratch, so the limit is never below the computed need.
    vmem_cap = vmem_phys // 2 if vmem_phys <= (64 << 20) else int(vmem_phys * 0.6)
    budget = max(vmem_cap - (8 << 20), 4 << 20)

    itemsize = jnp.dtype(x.dtype).itemsize
    pe_itemsize = jnp.dtype(add_dtype).itemsize

    # Small batch: precompute the PE table in the wrapper and stream it as a
    # resident input (no in-kernel transcendentals on the critical path, both
    # grid axes parallel).  Larger batch: generate PE once per seq tile
    # in-kernel and amortize it across the batch axis.
    precompute_pe = batch < 8

    tile_s, b_tile, n_in_buf, vmem_need = _choose_tiling(
        batch, seq, d_pad, itemsize, pe_itemsize, budget, precompute_pe)

    n_seq_tiles = pl.cdiv(seq, tile_s)
    n_batch_tiles = pl.cdiv(batch, b_tile)

    vmem_limit = int(min(max(vmem_cap, 16 << 20), vmem_phys - (4 << 20)))
    vmem_limit = int(max(vmem_limit, vmem_need + (2 << 20)))  # never below need

    out_spec = pl.BlockSpec((b_tile, tile_s, d_pad), lambda s, b: (b, s, 0))
    out_shape = jax.ShapeDtypeStruct((batch, seq, d_pad), x.dtype)
    flops = batch * seq * d_pad
    bytes_accessed = 2 * batch * seq * d_pad * itemsize

    if precompute_pe:
        # Pure streaming add: default 2-deep buffering already hides the DMA.
        pe = _pe_tile(0, seq, d_pad, d_model, add_dtype)  # built once by XLA
        x_spec = pl.BlockSpec((b_tile, tile_s, d_pad), lambda s, b: (b, s, 0))
        pe_spec = pl.BlockSpec((tile_s, d_pad), lambda s, b: (s, 0))
        cost = pl.CostEstimate(
            flops=flops, transcendentals=0,
            bytes_accessed=bytes_accessed + seq * d_pad * pe_itemsize)
        out = pl.pallas_call(
            _add_kernel,
            out_shape=out_shape,
            grid=(n_seq_tiles, n_batch_tiles),
            in_specs=[x_spec, pe_spec],
            out_specs=out_spec,
            compiler_params=pltpu.CompilerParams(
                dimension_semantics=("parallel", "parallel"),
                vmem_limit_bytes=vmem_limit),
            cost_estimate=cost,
        )(x_in, pe)
    else:
        kernel = functools.partial(_fused_kernel, tile_s=tile_s, d_pad=d_pad,
                                   d_model=d_model)
        # 3-deep input buffering (budget permitting) hides the per-seq-tile
        # sin burst behind prefetch.
        x_spec = _buffered_spec((b_tile, tile_s, d_pad),
                                lambda s, b: (b, s, 0), n_in_buf)
        cost = pl.CostEstimate(
            flops=flops,
            transcendentals=(seq + n_seq_tiles) * d_pad,
            bytes_accessed=bytes_accessed)
        out = pl.pallas_call(
            kernel,
            out_shape=out_shape,
            grid=(n_seq_tiles, n_batch_tiles),  # batch innermost: reuses cached PE
            in_specs=[x_spec],
            out_specs=out_spec,
            scratch_shapes=[pltpu.VMEM((tile_s, d_pad), add_dtype)],
            compiler_params=pltpu.CompilerParams(
                # seq tiles are independent (megacore may shard them); the
                # batch axis carries the cached-PE scratch -> keep 'arbitrary'.
                dimension_semantics=("parallel", "arbitrary"),
                vmem_limit_bytes=vmem_limit),
            cost_estimate=cost,
        )(x_in)

    return out if d_pad == d_model else out[:, :, :d_model]


# --------------------------------------------------------------------------
# Pure-JAX reference mirroring the PyTorch buffer construction
# --------------------------------------------------------------------------
def _reference(x: jax.Array, *, d_model: int) -> jax.Array:
    seq = x.shape[1]
    position = jnp.arange(seq, dtype=jnp.float32)[:, None]
    div_term = jnp.exp(jnp.arange(0, d_model, 2, dtype=jnp.float32)
                       * (-_LOG_BASE / d_model))
    pe = jnp.zeros((seq, d_model), jnp.float32)
    pe = pe.at[:, 0::2].set(jnp.sin(position * div_term))
    pe = pe.at[:, 1::2].set(jnp.cos(position * div_term))
    return x + pe[None, :, :]


if __name__ == "__main__":
    d_model = 32

    # Small-batch path (PE precomputed in wrapper, add-only kernel).
    batch, seq = 2, 8
    x = jax.random.normal(jax.random.PRNGKey(0), (batch, seq, d_model),
                          dtype=jnp.float32)
    out = jax.block_until_ready(
        positional_encoding(x, d_model=d_model, seq_len=seq, dropout=0.1))
    ref = _reference(x, d_model=d_model)
    assert out.shape == x.shape and out.dtype == x.dtype
    assert jnp.allclose(out, ref, atol=1e-5, rtol=1e-5), "small-batch mismatch"

    # Large-batch path (PE generated in-kernel, cached in VMEM scratch).
    batch2, seq2 = 8, 16
    x2 = jax.random.normal(jax.random.PRNGKey(1), (batch2, seq2, d_model),
                           dtype=jnp.float32)
    out2 = jax.block_until_ready(
        positional_encoding(x2, d_model=d_model, seq_len=seq2, dropout=0.1))
    ref2 = _reference(x2, d_model=d_model)
    assert jnp.allclose(out2, ref2, atol=1e-5, rtol=1e-5), "fused-path mismatch"

    print("KERNEL_OK")
</pallas_src>

<mosaic_0001>
module attributes {stable_mosaic.version = 11 : i64} {
  func.func @_add_kernel(%arg0: i32, %arg1: i32, %arg2: memref<2x8x128xf32, #tpu.memory_space<vmem>>, %arg3: memref<8x128xf32, #tpu.memory_space<vmem>>, %arg4: memref<2x8x128xf32, #tpu.memory_space<vmem>>) attributes {dimension_semantics = [#tpu.dimension_semantics<parallel>, #tpu.dimension_semantics<parallel>], iteration_bounds = array<i64: 1, 1>, scalar_prefetch = 0 : i64, scratch_operands = 0 : i64, tpu.core_type = #tpu.core_type<tc>, window_params = [{transform_indices = @transform_0, window_bounds = array<i64: 2, 8, 128>}, {transform_indices = @transform_1, window_bounds = array<i64: 8, 128>}, {transform_indices = @transform_2, window_bounds = array<i64: 2, 8, 128>}]} {
    %c0 = arith.constant 0 : index
    %c0_0 = arith.constant 0 : index
    %c0_1 = arith.constant 0 : index
    %0 = vector.load %arg2[%c0, %c0_0, %c0_1] : memref<2x8x128xf32, #tpu.memory_space<vmem>>, vector<2x8x128xf32>
    %c0_2 = arith.constant 0 : index
    %c0_3 = arith.constant 0 : index
    %1 = vector.load %arg3[%c0_2, %c0_3] : memref<8x128xf32, #tpu.memory_space<vmem>>, vector<8x128xf32>
    %2 = vector.shape_cast %1 : vector<8x128xf32> to vector<1x8x128xf32>
    %3 = vector.broadcast %2 : vector<1x8x128xf32> to vector<2x8x128xf32>
    %4 = arith.addf %0, %3 : vector<2x8x128xf32>
    %c0_4 = arith.constant 0 : index
    %c0_5 = arith.constant 0 : index
    %c0_6 = arith.constant 0 : index
    %5 = vector.load %arg4[%c0_4, %c0_5, %c0_6] : memref<2x8x128xf32, #tpu.memory_space<vmem>>, vector<2x8x128xf32>
    tpu.vector_store %arg4[%c0_4, %c0_5, %c0_6], %4 {strides = array<i32>} : memref<2x8x128xf32, #tpu.memory_space<vmem>>, vector<2x8x128xf32>,
    return
  }
  func.func @transform_0(%arg0: i32, %arg1: i32) -> (i32, i32, i32) {
    %c0_i32 = arith.constant 0 : i32
    %c0_i32_0 = arith.constant 0 : i32
    return %arg1, %arg0, %c0_i32 : i32, i32, i32
  }
  func.func @transform_1(%arg0: i32, %arg1: i32) -> (i32, i32) {
    %c0_i32 = arith.constant 0 : i32
    %c0_i32_0 = arith.constant 0 : i32
    return %arg0, %c0_i32 : i32, i32
  }
  func.func @transform_2(%arg0: i32, %arg1: i32) -> (i32, i32, i32) {
    %c0_i32 = arith.constant 0 : i32
    %c0_i32_0 = arith.constant 0 : i32
    return %arg1, %arg0, %c0_i32 : i32, i32, i32
  }
}

</mosaic_0001>

<bundles_post_ra>
// kernel: tpu_custom_call.1
= control target key start
LH: loop header
LB: loop body
LE: loop exit
PB: predicated region body
PF: predicated region fallthrough
CT: control target
= control target key end

     0   :  { %7 = vsyncpa [#allocation3], 0  ;;  %s169_s0 = inlined_call_operand.hbm [shape: f32[2,8,128], index: 0, kind: input, shape index: {}]   ;;  %s170_s1 = inlined_call_operand.hbm [shape: f32[8,128], index: 1, kind: input, shape index: {}]   ;;  %s171_s2 = inlined_call_operand.hbm [shape: f32[2,8,128], index: 2, kind: output, shape index: {}]  }
   0x1   :  { %8 = vsyncpa [#allocation6], 0 }
   0x2   :  { %9 = vsyncpa [#allocation4], 0  ;;  %s134_s9 = smov [#allocation2]  }
   0x3   :  { %s15_s10 = sshll.u32 %s134_s9, 4  ;;  %s16_s10 = int_to_ptr.vmem [resolvable:$true] %s15_s10 }
   0x4   :  { %s76_s11 = scalar_lea.vmem %s16_s10, 256  ;;  %p81_p1 = scmp.lt.s32.totalorder %s16_s10, %s16_s10 }
   0x5   :  { %p77_p0 = scmp.ne.s32.totalorder %s16_s10, %s76_s11  ;;  %p82_p2 = scmp.lt.s32.totalorder %s76_s11, %s76_s11 }
   0x7   :  { %p83_p3 = por %p82_p2, %p81_p1 }
   0x9   :  { %p84_p4 = pnand %p83_p3, %p77_p0 }
   0xb   :  { %87 = shalt.err (!%p84_p4)
}
   0xc   :  { %s135_s12 = smov 128   ;;  %s136_s13 = smov 8  }
   0xd   :  { %21 = dma.hbm_to_vmem [thread:$0]  %s169_s0, 256, %s16_s10, [#allocation3], %s135_s12, %s135_s12, %s136_s13  }
   0xe   :  { %s137_s16 = smov [#allocation5]  }
   0xf   :  { %s28_s17 = sshll.u32 %s137_s16, 4  ;;  %s29_s17 = int_to_ptr.vmem [resolvable:$true] %s28_s17 }
  0x10   :  { %s96_s18 = scalar_lea.vmem %s29_s17, 128  ;;  %p101_p6 = scmp.lt.s32.totalorder %s29_s17, %s29_s17 }
  0x11   :  { %p97_p5 = scmp.ne.s32.totalorder %s29_s17, %s96_s18  ;;  %p102_p7 = scmp.lt.s32.totalorder %s96_s18, %s96_s18 }
  0x13   :  { %p103_p8 = por %p102_p7, %p101_p6 }
  0x15   :  { %p104_p9 = pnand %p103_p8, %p97_p5 }
  0x17   :  { %107 = shalt.err (!%p104_p9)
}
  0x18   :  { %31 = dma.hbm_to_vmem [thread:$0]  %s170_s1, 128, %s29_s17, [#allocation6]  }
  0x19   :  { %128 = dma.done.wait [#allocation3], 256  }
  0x1a   :  { %129 = vsyncadd [#allocation3], 4294967040 }
  0x1b   :  { %130 = dma.done.wait [#allocation6], 128  }
  0x1c   :  { %131 = vsyncadd [#allocation6], 4294967168  ;;  %s138_s21 = smov [#allocation7]   ;;  %v38_v0 = vld [vmem:[#allocation2] sm:$0xff]  ;;  %v40_v1 = vld [vmem:[#allocation5] sm:$0xff] }
  0x1d   :  { %s50_s0 = sshll.u32 %s138_s21, 4  ;;  %v39_v2 = vld [vmem:[#allocation2 + $0x8] sm:$0xff]  ;;  %v41_v3 = vadd.f32 %v40_v1, %v38_v0  ;;  %s51_s0 = int_to_ptr.vmem [resolvable:$true] %s50_s0 }
  0x1e   :  { %v42_v4 = vadd.f32 %v40_v1, %v39_v2  ;;  %s108_s22 = scalar_lea.vmem %s51_s0, 256  ;;  %p113_p11 = scmp.lt.s32.totalorder %s51_s0, %s51_s0 }
  0x1f   :  { %43 = vst [vmem:[#allocation7] sm:$0xff] %v41_v3  ;;  %p109_p10 = scmp.ne.s32.totalorder %s51_s0, %s108_s22  ;;  %p114_p12 = scmp.lt.s32.totalorder %s108_s22, %s108_s22 }
  0x20   :  { %44 = vst [vmem:[#allocation7 + $0x8] sm:$0xff] %v42_v4 }
  0x21   :  { %p115_p13 = por %p114_p12, %p113_p11 }
  0x23   :  { %p116_p0 = pnand %p115_p13, %p109_p10 }
  0x25   :  { %119 = shalt.err (!%p116_p0)
}
  0x26   :  { %56 = dma.vmem_to_hbm [thread:$0]  %s51_s0, 256, %s171_s2, [#allocation4], %s135_s12, %s135_s12, %s136_s13  }
  0x27   :  { %132 = dma.done.wait [#allocation4], 256  }
  0x28   :  { %133 = vsyncadd [#allocation4], 4294967040 }
  0x29   :  { %60 = vsyncpa [#allocation3], 1 }
  0x2a   :  { %61 = vsyncpa [#allocation6], 1 }
  0x2b   :  { %62 = vsyncpa [#allocation4], 1 }

</bundles_post_ra>
